<compile_context>
chip_gen: v6e
topology: v6e:2x2x1
jax: 0.10.0
libtpu: 0.0.40
codegen_flags: <defaults>
</compile_context>

<pallas_src>
import functools

import jax
import jax.numpy as jnp
from jax.experimental import pallas as pl
from jax.experimental.pallas import tpu as pltpu


_LANES = 128
_SUBLANES = 8            # f32 sublane alignment (accumulation is f32)
_MAX_TILE_R = 2048       # (2048, 128) f32 block = 1 MiB per input per buffer
_MIN_PALLAS_BATCH = 8192  # below this, per-call overhead dominates -> plain JAX


def _round_up(x: int, m: int) -> int:
    return ((x + m - 1) // m) * m


def _bce_with_logits(x, y, label_smoothing: float):
    """Elementwise stable BCE-with-logits on float32, with label smoothing."""
    x = x.astype(jnp.float32)
    y = y.astype(jnp.float32)
    if label_smoothing != 0.0:
        y = y * (1.0 - label_smoothing) + label_smoothing / 2.0
    return jnp.maximum(x, 0.0) - x * y + jnp.log1p(jnp.exp(-jnp.abs(x)))


def _bce_ls_kernel(pred_ref, true_ref, out_ref, *,
                   label_smoothing: float, batch: int, tile_r: int,
                   num_tiles: int, tiles_per_core: int,
                   needs_gate: bool, needs_mask: bool):
    """pred_ref/true_ref: (tile_r, 128) native dtype.
    out_ref: (1, 8, 128) f32 — resident partial-sum accumulator for this core."""
    c = pl.program_id(0)            # core-split axis ("parallel")
    i = pl.program_id(1)            # streaming/reduction axis ("arbitrary")
    t = c * tiles_per_core + i      # global tile id

    # Init this core's accumulator block on its first inner step.
    @pl.when(i == 0)
    def _():
        out_ref[...] = jnp.zeros_like(out_ref)

    loss = _bce_with_logits(pred_ref[...], true_ref[...], label_smoothing)

    def accum(l):
        # Fold the sublane-group axis into the (8,128) accumulator:
        # pure vreg-wise VPU adds, no XLU, reshape stays on (8,128) tiles.
        out_ref[0] += l.reshape(tile_r // _SUBLANES, _SUBLANES, _LANES).sum(axis=0)

    if not needs_gate:
        # No padding / garbage / overhang anywhere: accumulate unconditionally.
        accum(loss)
    else:
        @pl.when(t < num_tiles - 1)
        def _():
            accum(loss)

        @pl.when(t == num_tiles - 1)
        def _():
            if needs_mask:
                # Only the last global tile can contain pad/garbage elements.
                base = t * (tile_r * _LANES)
                row = jax.lax.broadcasted_iota(jnp.int32, (tile_r, _LANES), 0)
                lane = jax.lax.broadcasted_iota(jnp.int32, (tile_r, _LANES), 1)
                flat = base + row * _LANES + lane
                accum(jnp.where(flat < batch, loss, 0.0))
            else:
                accum(loss)
        # t > num_tiles - 1: dummy overhang step on the short core — skipped.


def label_smoothing_bce(y_pred, y_true, label_smoothing: float):
    """y_pred: (B, 1) or (B,), y_true: (B,).  Returns scalar f32 loss (mean)."""
    assert y_true.ndim == 1
    if y_pred.ndim == 2:
        y_pred = jnp.squeeze(y_pred, axis=1)
    B = y_true.shape[0]
    assert y_pred.shape[0] == B
    label_smoothing = float(label_smoothing)

    # Tiny batches: fused XLA elementwise+reduce beats any pallas_call overhead.
    if B < _MIN_PALLAS_BATCH:
        return jnp.mean(_bce_with_logits(y_pred, y_true, label_smoothing))

    # int32 flat-index masking headroom.
    assert B < (1 << 31) - _MAX_TILE_R * _LANES

    rows = _round_up(pl.cdiv(B, _LANES), _SUBLANES)
    total = rows * _LANES
    tile_r = rows if rows <= _MAX_TILE_R else _MAX_TILE_R
    num_tiles = pl.cdiv(rows, tile_r)

    # Split the tile range 2-way for v7x's two TensorCores (no-op on v5e/v6e).
    nc = 2 if num_tiles >= 2 else 1
    tiles_per_core = pl.cdiv(num_tiles, nc)

    needs_mask = (total != B) or (rows % tile_r != 0)          # pad or partial last block
    needs_gate = needs_mask or (nc * tiles_per_core != num_tiles)  # + overhang dummy steps

    if total == B:
        # Zero-copy: contiguous 1-D -> 2-D reshape (no pad, no extra HBM traffic).
        pred2d = y_pred.reshape(rows, _LANES)
        true2d = y_true.reshape(rows, _LANES)
    else:
        # Ragged batch: minimal pad (< 1024 elements) so the reshape is legal.
        pred2d = jnp.pad(y_pred, (0, total - B)).reshape(rows, _LANES)
        true2d = jnp.pad(y_true, (0, total - B)).reshape(rows, _LANES)

    kernel = functools.partial(
        _bce_ls_kernel,
        label_smoothing=label_smoothing, batch=B, tile_r=tile_r,
        num_tiles=num_tiles, tiles_per_core=tiles_per_core,
        needs_gate=needs_gate, needs_mask=needs_mask)

    if nc * tiles_per_core == num_tiles:
        def in_map(c, i):
            return (c * tiles_per_core + i, 0)
    else:
        def in_map(c, i):
            # Clamp the (single) overhang step to the last real tile; its
            # contribution is skipped inside the kernel.
            return (jnp.minimum(c * tiles_per_core + i, num_tiles - 1), 0)

    cost = pl.CostEstimate(
        flops=6 * B,
        transcendentals=2 * B,
        bytes_accessed=int(B * (pred2d.dtype.itemsize + true2d.dtype.itemsize)
                           + nc * _SUBLANES * _LANES * 4),
    )

    partials = pl.pallas_call(
        kernel,
        out_shape=jax.ShapeDtypeStruct((nc, _SUBLANES, _LANES), jnp.float32),
        grid_spec=pltpu.PrefetchScalarGridSpec(
            num_scalar_prefetch=0,
            grid=(nc, tiles_per_core),
            in_specs=[
                pl.BlockSpec((tile_r, _LANES), in_map),
                pl.BlockSpec((tile_r, _LANES), in_map),
            ],
            out_specs=pl.BlockSpec((1, _SUBLANES, _LANES), lambda c, i: (c, 0, 0)),
        ),
        compiler_params=pltpu.CompilerParams(
            dimension_semantics=("parallel", "arbitrary"),
            vmem_limit_bytes=32 * 1024 * 1024,
        ),
        cost_estimate=cost,
    )(pred2d, true2d)

    # Tiny final reduce (nc * 8 * 128 elements) + mean in plain XLA.
    return jnp.sum(partials) / jnp.float32(B)


def _reference(y_pred, y_true, label_smoothing):
    x = jnp.squeeze(y_pred, axis=1) if y_pred.ndim == 2 else y_pred
    return jnp.mean(_bce_with_logits(x, y_true, label_smoothing))


if __name__ == "__main__":
    label_smoothing = 0.1
    key = jax.random.PRNGKey(0)

    # 1) Small batch consistent with the module spec (plain-JAX fast path).
    k1, k2, key = jax.random.split(key, 3)
    B = 8
    y_pred = jax.random.normal(k1, (B, 1), dtype=jnp.float32)          # logits
    y_true = jax.random.bernoulli(k2, 0.5, (B,)).astype(jnp.float32)   # {0,1} labels
    loss = jax.block_until_ready(label_smoothing_bce(y_pred, y_true, label_smoothing))
    ref = _reference(y_pred, y_true, label_smoothing)
    assert jnp.allclose(loss, ref, atol=1e-5, rtol=1e-5), (loss, ref)

    # 2) Kernel path, aligned batch (zero-copy reshape, no mask, single tile).
    k1, k2, key = jax.random.split(key, 3)
    B = 8192
    y_pred = jax.random.normal(k1, (B, 1), dtype=jnp.float32)
    y_true = jax.random.bernoulli(k2, 0.5, (B,)).astype(jnp.float32)
    loss = jax.block_until_ready(label_smoothing_bce(y_pred, y_true, label_smoothing))
    ref = _reference(y_pred, y_true, label_smoothing)
    assert jnp.allclose(loss, ref, atol=1e-5, rtol=1e-5), (loss, ref)

    # 3) Kernel path, ragged multi-tile batch (2-way core split + last-tile mask).
    k1, k2, key = jax.random.split(key, 3)
    B = 300_000
    y_pred = jax.random.normal(k1, (B, 1), dtype=jnp.float32)
    y_true = jax.random.bernoulli(k2, 0.5, (B,)).astype(jnp.float32)
    loss = jax.block_until_ready(label_smoothing_bce(y_pred, y_true, label_smoothing))
    ref = _reference(y_pred, y_true, label_smoothing)
    assert jnp.allclose(loss, ref, atol=1e-5, rtol=1e-5), (loss, ref)

    print("KERNEL_OK")
</pallas_src>

<mosaic_0001>
module attributes {stable_mosaic.version = 11 : i64} {
  func.func @_bce_ls_kernel(%arg0: i32, %arg1: i32, %arg2: memref<64x128xf32, #tpu.memory_space<vmem>>, %arg3: memref<64x128xf32, #tpu.memory_space<vmem>>, %arg4: memref<1x8x128xf32, #tpu.memory_space<vmem>>) attributes {dimension_semantics = [#tpu.dimension_semantics<parallel>, #tpu.dimension_semantics<arbitrary>], iteration_bounds = array<i64: 1, 1>, scalar_prefetch = 0 : i64, scratch_operands = 0 : i64, tpu.core_type = #tpu.core_type<tc>, window_params = [{transform_indices = @transform_0, window_bounds = array<i64: 64, 128>}, {transform_indices = @transform_1, window_bounds = array<i64: 64, 128>}, {transform_indices = @transform_2, window_bounds = array<i64: 1, 8, 128>}]} {
    %c0_i32 = arith.constant 0 : i32
    %0 = arith.cmpi eq, %arg1, %c0_i32 : i32
    %1 = arith.extui %0 : i1 to i32
    %c0_i32_0 = arith.constant 0 : i32
    %2 = arith.cmpi ne, %1, %c0_i32_0 : i32
    scf.if %2 {
      %cst_14 = arith.constant 0.000000e+00 : f32
      %27 = vector.broadcast %cst_14 : f32 to vector<1x8x128xf32>
      %c0_15 = arith.constant 0 : index
      %c0_16 = arith.constant 0 : index
      %c0_17 = arith.constant 0 : index
      %28 = vector.load %arg4[%c0_15, %c0_16, %c0_17] : memref<1x8x128xf32, #tpu.memory_space<vmem>>, vector<1x8x128xf32>
      tpu.vector_store %arg4[%c0_15, %c0_16, %c0_17], %27 {strides = array<i32>} : memref<1x8x128xf32, #tpu.memory_space<vmem>>, vector<1x8x128xf32>,
    } else {
    }
    %c0 = arith.constant 0 : index
    %c0_1 = arith.constant 0 : index
    %3 = vector.load %arg2[%c0, %c0_1] : memref<64x128xf32, #tpu.memory_space<vmem>>, vector<64x128xf32>
    %c0_2 = arith.constant 0 : index
    %c0_3 = arith.constant 0 : index
    %4 = vector.load %arg3[%c0_2, %c0_3] : memref<64x128xf32, #tpu.memory_space<vmem>>, vector<64x128xf32>
    %cst = arith.constant 0.899999976 : f32
    %5 = vector.broadcast %cst : f32 to vector<64x128xf32>
    %6 = arith.mulf %4, %5 : vector<64x128xf32>
    %cst_4 = arith.constant 5.000000e-02 : f32
    %7 = vector.broadcast %cst_4 : f32 to vector<64x128xf32>
    %8 = arith.addf %6, %7 : vector<64x128xf32>
    %cst_5 = arith.constant 0.000000e+00 : f32
    %9 = vector.broadcast %cst_5 : f32 to vector<64x128xf32>
    %10 = arith.maximumf %3, %9 : vector<64x128xf32>
    %11 = arith.mulf %3, %8 : vector<64x128xf32>
    %12 = arith.subf %10, %11 : vector<64x128xf32>
    %13 = math.absf %3 : vector<64x128xf32>
    %cst_6 = arith.constant 0.000000e+00 : f32
    %14 = vector.broadcast %cst_6 : f32 to vector<64x128xf32>
    %15 = arith.subf %14, %13 : vector<64x128xf32>
    %16 = math.exp %15 : vector<64x128xf32>
    %17 = math.log1p %16 : vector<64x128xf32>
    %18 = arith.addf %12, %17 : vector<64x128xf32>
    %c0_7 = arith.constant 0 : index
    %c0_8 = arith.constant 0 : index
    %c0_9 = arith.constant 0 : index
    %19 = vector.load %arg4[%c0_7, %c0_8, %c0_9] : memref<1x8x128xf32, #tpu.memory_space<vmem>>, vector<1x8x128xf32>
    %20 = vector.shape_cast %19 : vector<1x8x128xf32> to vector<8x128xf32>
    %21 = vector.shape_cast %18 : vector<64x128xf32> to vector<8x8x128xf32>
    %cst_10 = arith.constant dense<0.000000e+00> : vector<8x128xf32>
    %22 = vector.multi_reduction <add>, %21, %cst_10 [0] : vector<8x8x128xf32> to vector<8x128xf32>
    %23 = arith.addf %20, %22 : vector<8x128xf32>
    %c0_11 = arith.constant 0 : index
    %c0_12 = arith.constant 0 : index
    %c0_13 = arith.constant 0 : index
    %24 = vector.load %arg4[%c0_11, %c0_12, %c0_13] : memref<1x8x128xf32, #tpu.memory_space<vmem>>, vector<1x8x128xf32>
    %25 = vector.shape_cast %24 : vector<1x8x128xf32> to vector<8x128xf32>
    %26 = vector.shape_cast %23 : vector<8x128xf32> to vector<1x8x128xf32>
    tpu.vector_store %arg4[%c0_11, %c0_12, %c0_13], %26 {strides = array<i32>} : memref<1x8x128xf32, #tpu.memory_space<vmem>>, vector<1x8x128xf32>,
    return
  }
  func.func @transform_0(%arg0: i32, %arg1: i32) -> (i32, i32) {
    %c1_i32 = arith.constant 1 : i32
    %0 = arith.muli %arg0, %c1_i32 : i32
    %1 = arith.addi %0, %arg1 : i32
    %c0_i32 = arith.constant 0 : i32
    %c0_i32_0 = arith.constant 0 : i32
    return %1, %c0_i32 : i32, i32
  }
  func.func @transform_1(%arg0: i32, %arg1: i32) -> (i32, i32) {
    %c1_i32 = arith.constant 1 : i32
    %0 = arith.muli %arg0, %c1_i32 : i32
    %1 = arith.addi %0, %arg1 : i32
    %c0_i32 = arith.constant 0 : i32
    %c0_i32_0 = arith.constant 0 : i32
    return %1, %c0_i32 : i32, i32
  }
  func.func @transform_2(%arg0: i32, %arg1: i32) -> (i32, i32, i32) {
    %c0_i32 = arith.constant 0 : i32
    %c0_i32_0 = arith.constant 0 : i32
    %c0_i32_1 = arith.constant 0 : i32
    return %arg0, %c0_i32, %c0_i32_0 : i32, i32, i32
  }
}

</mosaic_0001>

<bundles_post_ra>
// kernel: tpu_custom_call.1
= control target key start
LH: loop header
LB: loop body
LE: loop exit
PB: predicated region body
PF: predicated region fallthrough
CT: control target
= control target key end

     0   :  { %7 = vsyncpa [#allocation3], 0  ;;  %s518_s0 = inlined_call_operand.hbm [shape: f32[64,128], index: 0, kind: input, shape index: {}]   ;;  %s519_s1 = inlined_call_operand.hbm [shape: f32[64,128], index: 1, kind: input, shape index: {}]   ;;  %s520_s2 = inlined_call_operand.hbm [shape: f32[1,8,128], index: 2, kind: output, shape index: {}]  }
   0x1   :  { %8 = vsyncpa [#allocation6], 0 }
   0x2   :  { %9 = vsyncpa [#allocation4], 0  ;;  %s355_s9 = smov [#allocation2]  }
   0x3   :  { %s19_s10 = sshll.u32 %s355_s9, 4  ;;  %s20_s10 = int_to_ptr.vmem [resolvable:$true] %s19_s10 }
   0x4   :  { %s297_s11 = scalar_lea.vmem %s20_s10, 1024  ;;  %p302_p1 = scmp.lt.s32.totalorder %s20_s10, %s20_s10 }
   0x5   :  { %p298_p0 = scmp.ne.s32.totalorder %s20_s10, %s297_s11  ;;  %p303_p2 = scmp.lt.s32.totalorder %s297_s11, %s297_s11 }
   0x7   :  { %p304_p3 = por %p303_p2, %p302_p1 }
   0x9   :  { %p305_p4 = pnand %p304_p3, %p298_p0 }
   0xb   :  { %308 = shalt.err (!%p305_p4)
}
   0xc   :  { %s356_s12 = smov 128   ;;  %s357_s13 = smov 8  }
   0xd   :  { %25 = dma.hbm_to_vmem [thread:$0]  %s518_s0, 1024, %s20_s10, [#allocation3], %s356_s12, %s356_s12, %s357_s13  }
   0xe   :  { %s358_s16 = smov [#allocation5]  }
   0xf   :  { %s35_s17 = sshll.u32 %s358_s16, 4  ;;  %s36_s17 = int_to_ptr.vmem [resolvable:$true] %s35_s17 }
  0x10   :  { %s317_s18 = scalar_lea.vmem %s36_s17, 1024  ;;  %p322_p6 = scmp.lt.s32.totalorder %s36_s17, %s36_s17 }
  0x11   :  { %p318_p5 = scmp.ne.s32.totalorder %s36_s17, %s317_s18  ;;  %p323_p7 = scmp.lt.s32.totalorder %s317_s18, %s317_s18 }
  0x13   :  { %p324_p8 = por %p323_p7, %p322_p6 }
  0x15   :  { %p325_p9 = pnand %p324_p8, %p318_p5 }
  0x17   :  { %328 = shalt.err (!%p325_p9)
}
  0x18   :  { %41 = dma.hbm_to_vmem [thread:$0]  %s519_s1, 1024, %s36_s17, [#allocation6], %s356_s12, %s356_s12, %s357_s13  }
  0x19   :  { %349 = dma.done.wait [#allocation3], 1024  }
  0x1a   :  { %350 = vsyncadd [#allocation3], 4294966272 }
  0x1b   :  { %351 = dma.done.wait [#allocation6], 1024  }
  0x1c   :  { %352 = vsyncadd [#allocation6], 4294966272  ;;  %v381_v0 = vld [vmem:[#allocation2] sm:$0xff]  ;;  %v383_v1 = vld [vmem:[#allocation2 + $0x8] sm:$0xff]  ;;  %s359_s0 = smov [#allocation7]  }
  0x1d   :  { %v385_v2 = vld [vmem:[#allocation2 + $0x10] sm:$0xff]  ;;  %v387_v3 = vld [vmem:[#allocation2 + $0x18] sm:$0xff]  ;;  %v389_v4 = vld [vmem:[#allocation2 + $0x20] sm:$0xff]  ;;  %v113_v8 = vand.u32 2147483647, %v381_v0  ;;  %v89_v44 = vmax.f32 %v381_v0, 0.0 }
  0x1e   :  { %v391_v5 = vld [vmem:[#allocation2 + $0x28] sm:$0xff]  ;;  %v393_v6 = vld [vmem:[#allocation2 + $0x30] sm:$0xff]  ;;  %v395_v7 = vld [vmem:[#allocation2 + $0x38] sm:$0xff]  ;;  %v114_v9 = vand.u32 2147483647, %v383_v1  ;;  %v90_v45 = vmax.f32 %v383_v1, 0.0 }
  0x1f   :  { %v115_v10 = vand.u32 2147483647, %v385_v2  ;;  %v116_v11 = vand.u32 2147483647, %v387_v3  ;;  %v117_v12 = vand.u32 2147483647, %v389_v4 }
  0x20   :  { %v118_v13 = vand.u32 2147483647, %v391_v5  ;;  %v119_v14 = vand.u32 2147483647, %v393_v6  ;;  %v121_v15 = vsub.f32 0.0, %v113_v8  ;;  %v122_v16 = vsub.f32 0.0, %v114_v9 }
  0x21   :  { %v123_v17 = vsub.f32 0.0, %v115_v10  ;;  %v120_v18 = vand.u32 2147483647, %v395_v7  ;;  %v124_v19 = vsub.f32 0.0, %v116_v11  ;;  %v125_v20 = vsub.f32 0.0, %v117_v12  ;;  %v65_v32 = vld [vmem:[#allocation5] sm:$0xff] }
  0x22   :  { %v126_v21 = vsub.f32 0.0, %v118_v13  ;;  %v129_v22 = vmul.f32 1.442695, %v121_v15  ;;  %v131_v23 = vmul.f32 1.442695, %v122_v16  ;;  %v127_v24 = vsub.f32 0.0, %v119_v14 }
  0x23   :  { %v133_v25 = vmul.f32 1.442695, %v123_v17  ;;  %v135_v26 = vmul.f32 1.442695, %v124_v19  ;;  %v137_v27 = vmul.f32 1.442695, %v125_v20 }
  0x24   :  { %257 = vpow2.f32 %v129_v22  ;;  %v128_v28 = vsub.f32 0.0, %v120_v18  ;;  %v139_v29 = vmul.f32 1.442695, %v126_v21  ;;  %v141_v30 = vmul.f32 1.442695, %v127_v24  ;;  %v66_v33 = vld [vmem:[#allocation5 + $0x8] sm:$0xff] }
  0x25   :  { %259 = vpow2.f32 %v131_v23  ;;  %v67_v34 = vld [vmem:[#allocation5 + $0x10] sm:$0xff]  ;;  %v68_v35 = vld [vmem:[#allocation5 + $0x18] sm:$0xff]  ;;  %v69_v36 = vld [vmem:[#allocation5 + $0x20] sm:$0xff]  ;;  %v73_v39 = vmul.f32 0.9, %v65_v32  ;;  %v91_v46 = vmax.f32 %v385_v2, 0.0 }
  0x26   :  { %261 = vpow2.f32 %v133_v25  ;;  %v143_v31 = vmul.f32 1.442695, %v128_v28  ;;  %v70_v37 = vld [vmem:[#allocation5 + $0x28] sm:$0xff]  ;;  %v71_v38 = vld [vmem:[#allocation5 + $0x30] sm:$0xff]  ;;  %v72_v40 = vld [vmem:[#allocation5 + $0x38] sm:$0xff]  ;;  %v92_v54 = vmax.f32 %v387_v3, 0.0 }
  0x27   :  { %263 = vpow2.f32 %v135_v26  ;;  %v74_v41 = vmul.f32 0.9, %v66_v33  ;;  %v75_v42 = vmul.f32 0.9, %v67_v34  ;;  %v76_v43 = vmul.f32 0.9, %v68_v35 }
  0x28   :  { %265 = vpow2.f32 %v137_v27  ;;  %v77_v48 = vmul.f32 0.9, %v69_v36  ;;  %v78_v49 = vmul.f32 0.9, %v70_v37  ;;  %v79_v50 = vmul.f32 0.9, %v71_v38 }
  0x29   :  { %267 = vpow2.f32 %v139_v29  ;;  %v80_v52 = vmul.f32 0.9, %v72_v40  ;;  %v81_v53 = vadd.f32 0.05, %v73_v39  ;;  %v82_v57 = vadd.f32 0.05, %v74_v41 }
  0x2a   :  { %269 = vpow2.f32 %v141_v30  ;;  %v83_v58 = vadd.f32 0.05, %v75_v42  ;;  %v93_v59 = vmax.f32 %v389_v4, 0.0  ;;  %v84_v62 = vadd.f32 0.05, %v76_v43  ;;  %s241_s1 = sshll.u32 %s359_s0, 4  ;;  %s242_s1 = int_to_ptr.vmem [resolvable:$true] %s241_s1 }
  0x2b   :  { %271 = vpow2.f32 %v143_v31  ;;  %v94_v63 = vmax.f32 %v391_v5, 0.0  ;;  %v85_v10 = vadd.f32 0.05, %v77_v48  ;;  %v86_v11 = vadd.f32 0.05, %v78_v49  ;;  %s329_s21 = scalar_lea.vmem %s242_s1, 128  ;;  %p334_p11 = scmp.lt.s32.totalorder %s242_s1, %s242_s1 }
  0x2c   :  { %v87_v12 = vadd.f32 0.05, %v79_v50  ;;  %v88_v13 = vadd.f32 0.05, %v80_v52  ;;  %v95_v14 = vmax.f32 %v393_v6, 0.0  ;;  %v96_v17 = vmax.f32 %v395_v7, 0.0  ;;  %p330_p10 = scmp.ne.s32.totalorder %s242_s1, %s329_s21  ;;  %p335_p12 = scmp.lt.s32.totalorder %s329_s21, %s329_s21 }
  0x2d   :  { %v97_v18 = vmul.f32 %v81_v53, %v381_v0  ;;  %v98_v19 = vmul.f32 %v82_v57, %v383_v1  ;;  %v99_v20 = vmul.f32 %v83_v58, %v385_v2  ;;  %v100_v22 = vmul.f32 %v84_v62, %v387_v3 }
  0x2e   :  { %v101_v25 = vmul.f32 %v85_v10, %v389_v4  ;;  %v102_v26 = vmul.f32 %v86_v11, %v391_v5  ;;  %v440_v27 = vmul.f32 %v87_v12, %v393_v6  ;;  %v446_v2 = vmul.f32 %v88_v13, %v395_v7  ;;  %p336_p13 = por %p335_p12, %p334_p11 }
  0x2f   :  { %v105_v29 = vsub.f32 %v89_v44, %v97_v18  ;;  %v106_v30 = vsub.f32 %v90_v45, %v98_v19  ;;  %v107_v37 = vsub.f32 %v91_v46, %v99_v20  ;;  %v108_v41 = vsub.f32 %v92_v54, %v100_v22 }
  0x30   :  { %v109_v42 = vsub.f32 %v93_v59, %v101_v25  ;;  %v110_v44 = vsub.f32 %v94_v63, %v102_v26  ;;  %p337_p0 = pnand %p336_p13, %p330_p10 }
  0x31   :  { %v408_v47 = vpop.eup %257 }
  0x32   :  { %v410_v51 = vpop.eup %259  ;;  %v145_v55 = vadd.f32 1.0, %v408_v47  ;;  %v148_v23 = vmul.f32 -0.5, %v408_v47  ;;  %v151_v4 = vand.u32 2147483647, %v408_v47 }
  0x33   :  { %v414_v56 = vpop.eup %261  ;;  %v154_v60 = vadd.f32 1.0, %v410_v51  ;;  %v157_v0 = vmul.f32 -0.5, %v410_v51  ;;  %v160_v32 = vand.u32 2147483647, %v410_v51 }
  0x34   :  { %v418_v61 = vpop.eup %263  ;;  %273 = vlog2.f32 %v145_v55  ;;  %v163_v8 = vadd.f32 1.0, %v414_v56  ;;  %v166_v3 = vmul.f32 -0.5, %v414_v56  ;;  %v149_v31 = vadd.f32 1.0, %v148_v23 }
  0x35   :  { %v422_v9 = vpop.eup %265  ;;  %275 = vlog2.f32 %v154_v60  ;;  %v172_v15 = vadd.f32 1.0, %v418_v61  ;;  %v175_v33 = vmul.f32 -0.5, %v418_v61  ;;  %v158_v34 = vadd.f32 1.0, %v157_v0 }
  0x36   :  { %277 = vlog2.f32 %v163_v8  ;;  %v426_v16 = vpop.eup %267  ;;  %v181_v24 = vadd.f32 1.0, %v422_v9  ;;  %v184_v35 = vmul.f32 -0.5, %v422_v9  ;;  %v167_v38 = vadd.f32 1.0, %v166_v3 }
  0x37   :  { %v432_v21 = vpop.eup %269  ;;  %279 = vlog2.f32 %v172_v15  ;;  %v190_v28 = vadd.f32 1.0, %v426_v16  ;;  %v169_v39 = vand.u32 2147483647, %v414_v56  ;;  %v178_v40 = vand.u32 2147483647, %v418_v61 }
  0x38   :  { %v443_v1 = vpop.eup %271  ;;  %281 = vlog2.f32 %v181_v24  ;;  %v199_v5 = vadd.f32 1.0, %v432_v21  ;;  %v193_v43 = vmul.f32 -0.5, %v426_v16  ;;  %v150_v45 = vmul.f32 %v408_v47, %v149_v31 }
  0x39   :  { %283 = vlog2.f32 %v190_v28  ;;  %v208_v36 = vadd.f32 1.0, %v443_v1  ;;  %vm460_vm0 = vcmp.lt.f32.partialorder %v151_v4, 0.0004427343  ;;  %v176_v49 = vadd.f32 1.0, %v175_v33 }
  0x3a   :  { %285 = vlog2.f32 %v199_v5  ;;  %v159_v46 = vmul.f32 %v410_v51, %v158_v34  ;;  %vm465_vm1 = vcmp.lt.f32.partialorder %v160_v32, 0.0004427343  ;;  %v185_v53 = vadd.f32 1.0, %v184_v35 }
  0x3b   :  { %287 = vlog2.f32 %v208_v36  ;;  %v202_v54 = vmul.f32 -0.5, %v432_v21  ;;  %v168_v58 = vmul.f32 %v414_v56, %v167_v38  ;;  %vm471_vm2 = vcmp.lt.f32.partialorder %v169_v39, 0.0004427343 }
  0x3c   :  { %vm475_vm3 = vcmp.lt.f32.partialorder %v178_v40, 0.0004427343  ;;  %v187_v62 = vand.u32 2147483647, %v422_v9  ;;  %v194_v63 = vadd.f32 1.0, %v193_v43  ;;  %v211_v8 = vmul.f32 -0.5, %v443_v1 }
  0x3d   :  { %v177_v56 = vmul.f32 %v418_v61, %v176_v49  ;;  %v196_v12 = vand.u32 2147483647, %v426_v16  ;;  %v186_v18 = vmul.f32 %v422_v9, %v185_v53  ;;  %v203_v19 = vadd.f32 1.0, %v202_v54 }
  0x3e   :  { %v205_v24 = vand.u32 2147483647, %v432_v21  ;;  %vm491_vm4 = vcmp.lt.f32.partialorder %v187_v62, 0.0004427343  ;;  %v195_v0 = vmul.f32 %v426_v16, %v194_v63  ;;  %v212_v3 = vadd.f32 1.0, %v211_v8 }
  0x3f   :  { %v214_v4 = vand.u32 2147483647, %v443_v1  ;;  %vm502_vm5 = vcmp.lt.f32.partialorder %v196_v12, 0.0004427343  ;;  %v204_v16 = vmul.f32 %v432_v21, %v203_v19 }
  0x40   :  { %vm206_vm6 = vcmp.lt.f32.partialorder %v205_v24, 0.0004427343  ;;  %v213_v39 = vmul.f32 %v443_v1, %v212_v3 }
  0x41   :  { %v274_v50 = vpop.eup %273  ;;  %vm215_vm7 = vcmp.lt.f32.partialorder %v214_v4, 0.0004427343 }
  0x42   :  { %v276_v55 = vpop.eup %275  ;;  %v147_v57 = vmul.f32 0.6931472, %v274_v50 }
  0x43   :  { %v278_v51 = vpop.eup %277  ;;  %v156_v60 = vmul.f32 0.6931472, %v276_v55 }
  0x44   :  { %v153_v10 = vsel %vm460_vm0, %v150_v45, %v147_v57  ;;  %v165_v11 = vmul.f32 0.6931472, %v278_v51  ;;  %v280_v13 = vpop.eup %279 }
  0x45   :  { %v162_v15 = vsel %vm465_vm1, %v159_v46, %v156_v60  ;;  %v217_v20 = vadd.f32 %v153_v10, %v105_v29  ;;  %v174_v23 = vmul.f32 0.6931472, %v280_v13  ;;  %v282_v26 = vpop.eup %281 }
  0x46   :  { %v171_v22 = vsel %vm471_vm2, %v168_v58, %v165_v11  ;;  %v218_v25 = vadd.f32 %v162_v15, %v106_v30  ;;  %v183_v29 = vmul.f32 0.6931472, %v282_v26  ;;  %v284_v31 = vpop.eup %283  ;;  %v111_v30 = vsub.f32 %v95_v14, %v440_v27 }
  0x47   :  { %v219_v28 = vadd.f32 %v171_v22, %v107_v37  ;;  %v180_v9 = vsel %vm475_vm3, %v177_v56, %v174_v23  ;;  %v286_v34 = vpop.eup %285  ;;  %v192_v36 = vmul.f32 0.6931472, %v284_v31  ;;  %v112_v14 = vsub.f32 %v96_v17, %v446_v2 }
  0x48   :  { %v226_v5 = vadd.f32 %v218_v25, %v217_v20  ;;  %v220_v33 = vadd.f32 %v180_v9, %v108_v41  ;;  %v189_v35 = vsel %vm491_vm4, %v186_v18, %v183_v29  ;;  %v201_v38 = vmul.f32 0.6931472, %v286_v34  ;;  %v288_v6 = vpop.eup %287 }
  0x49   :  { %v221_v40 = vadd.f32 %v189_v35, %v109_v42  ;;  %v198_v21 = vsel %vm502_vm5, %v195_v0, %v192_v36  ;;  %v210_v43 = vmul.f32 0.6931472, %v288_v6 }
  0x4a   :  { %v227_v37 = vadd.f32 %v226_v5, %v219_v28  ;;  %v207_v41 = vsel %vm206_vm6, %v204_v16, %v201_v38  ;;  %v222_v45 = vadd.f32 %v198_v21, %v110_v44 }
  0x4b   :  { %v223_v48 = vadd.f32 %v207_v41, %v111_v30  ;;  %v216_v50 = vsel %vm215_vm7, %v213_v39, %v210_v43 }
  0x4c   :  { %v228_v27 = vadd.f32 %v227_v37, %v220_v33  ;;  %v224_v46 = vadd.f32 %v216_v50, %v112_v14 }
  0x4e   :  { %v229_v49 = vadd.f32 %v228_v27, %v221_v40 }
  0x50   :  { %v230_v52 = vadd.f32 %v229_v49, %v222_v45 }
  0x52   :  { %v231_v1 = vadd.f32 %v230_v52, %v223_v48 }
  0x54   :  { %v232_v42 = vadd.f32 %v231_v1, %v224_v46 }
  0x56   :  { %234 = vst [vmem:[#allocation7] sm:$0xff] %v232_v42 }
  0x57   :  { %340 = shalt.err (!%p337_p0)
}
  0x58   :  { %244 = dma.vmem_to_hbm [thread:$0]  %s242_s1, 128, %s520_s2, [#allocation4]  }
  0x59   :  { %353 = dma.done.wait [#allocation4], 128  }
  0x5a   :  { %354 = vsyncadd [#allocation4], 4294967168 }
  0x5b   :  { %248 = vsyncpa [#allocation3], 1 }
  0x5c   :  { %249 = vsyncpa [#allocation6], 1 }
  0x5d   :  { %250 = vsyncpa [#allocation4], 1 }

</bundles_post_ra>
